<compile_context>
chip_gen: v5e
topology: v5e:2x2
jax: 0.10.0
libtpu: 0.0.40
codegen_flags: <defaults>
</compile_context>

<pallas_src>
import functools

import jax
import jax.numpy as jnp
from jax.experimental import pallas as pl
from jax.experimental.pallas import tpu as pltpu

LANE = 128      # lane width: pad the action axis up to this for dense stores
SUBLANE = 8     # f32 sublane height: batch tiles are multiples of this


def _round_up(x, m):
    return ((x + m - 1) // m) * m


def actor_kernel(x_ref, w1_ref, b1_ref, w2_ref, b2_ref, w3_ref, b3_ref, out_ref):
    # x_ref: (TB, in_dims) bf16; w*: bf16; b*: f32; out_ref: (TB, ACT_PAD) f32
    x = x_ref[...]

    # fc1 + ReLU (bf16 MXU inputs, f32 accumulate, f32 elementwise)
    h1 = jnp.dot(x, w1_ref[...], preferred_element_type=jnp.float32) + b1_ref[...]
    h1 = jnp.maximum(h1, 0.0).astype(jnp.bfloat16)

    # fc2 + ReLU
    h2 = jnp.dot(h1, w2_ref[...], preferred_element_type=jnp.float32) + b2_ref[...]
    h2 = jnp.maximum(h2, 0.0).astype(jnp.bfloat16)

    # fc3 (logits); padded action columns carry a -1e30 bias -> exp underflows to 0
    logits = jnp.dot(h2, w3_ref[...], preferred_element_type=jnp.float32) + b3_ref[...]

    # numerically-stable softmax over the padded action axis (EUP exp + approx recip)
    m = jnp.max(logits, axis=-1, keepdims=True)
    e = jnp.exp(logits - m)
    denom = jnp.sum(e, axis=-1, keepdims=True)
    # TODO(synk): if PPO log-prob ratios are computed from these probs, switch to
    # an exact reciprocal (or renormalize); approx gives ~1e-3 relative error.
    out_ref[...] = e * pl.reciprocal(denom, approx=True)


def init_params(key, input_dims, fc1_dims, fc2_dims, n_actions):
    """Deterministic init mirroring nn.Linear's default U(-1/sqrt(in), 1/sqrt(in)).
    Weights are stored as (in, out) (PyTorch weight transposed), f32."""
    ks = jax.random.split(key, 6)

    def linear(kw, kb, fan_in, fan_out):
        bound = 1.0 / jnp.sqrt(fan_in)
        w = jax.random.uniform(kw, (fan_in, fan_out), jnp.float32, -bound, bound)
        b = jax.random.uniform(kb, (1, fan_out), jnp.float32, -bound, bound)
        return w, b

    w1, b1 = linear(ks[0], ks[1], input_dims, fc1_dims)
    w2, b2 = linear(ks[2], ks[3], fc1_dims, fc2_dims)
    w3, b3 = linear(ks[4], ks[5], fc2_dims, n_actions)
    return (w1, b1, w2, b2, w3, b3)


def prepare_params(params):
    """One-time layout prep (outside the hot path):
      * matmul weights -> bf16
      * fc3 output padded to LANE columns; padded bias columns are -1e30 so
        their softmax probability is exactly 0
      * the input-feature axis is NOT padded (pure savings on x DMA + no extra
        XLA pad op per forward)."""
    w1, b1, w2, b2, w3, b3 = params
    fc2, n_actions = w3.shape
    act_pad = _round_up(n_actions, LANE)

    w3p = jnp.zeros((fc2, act_pad), jnp.float32).at[:, :n_actions].set(w3)
    b3p = jnp.full((1, act_pad), -1e30, jnp.float32).at[:, :n_actions].set(b3)

    prepped = (
        w1.astype(jnp.bfloat16),
        b1,                              # f32
        w2.astype(jnp.bfloat16),
        b2,                              # f32
        w3p.astype(jnp.bfloat16),
        b3p,                             # f32 (with -1e30 padding)
    )
    return prepped


def _pick_batch_tile(batch):
    """Batch-tile selection:
       * tiny batches (<=16): one tile rounded to the sublane -> no wasted rows
       * otherwise: at least two tiles (so v7x's second TensorCore gets work),
         capped at 512 rows; per-tile VMEM stays ~1-2 MiB while amortizing the
         per-grid-step overhead."""
    if batch <= 16:
        return _round_up(batch, SUBLANE)
    half = _round_up((batch + 1) // 2, 16)
    return min(512, half)


def actor_forward_padded(state, prepped_params):
    """Hot path.  Runs the fused MLP+softmax kernel and returns the *padded*
    probability buffer of shape (padded_batch, ACT_PAD):
      * columns >= n_actions are exactly 0 (safe to gather/sample over directly)
      * rows    >= batch are softmax-of-padding garbage and must be ignored.
    Returning the padded buffer avoids an extra XLA slice copy after the call."""
    w1, b1, w2, b2, w3, b3 = prepped_params
    batch, in_dims = state.shape
    assert in_dims == w1.shape[0]
    fc1 = w1.shape[1]
    fc2 = w2.shape[1]
    act_pad = w3.shape[1]

    TB = _pick_batch_tile(batch)
    padded_batch = _round_up(batch, TB)

    x = state.astype(jnp.bfloat16)
    if padded_batch != batch:
        x = jnp.zeros((padded_batch, in_dims), jnp.bfloat16).at[:batch, :].set(x)

    grid = (padded_batch // TB,)

    # Weights/biases never change across grid steps (constant index_map), so a
    # single VMEM buffer suffices -- no second prefetch buffer set.
    resident = functools.partial(pl.BlockSpec, pipeline_mode=pl.Buffered(1))

    flops = 2 * padded_batch * (in_dims * fc1 + fc1 * fc2 + fc2 * act_pad)
    transcendentals = padded_batch * act_pad  # softmax exp
    bytes_accessed = (
        padded_batch * in_dims * 2                       # bf16 state in
        + (w1.size + w2.size + w3.size) * 2              # bf16 weights
        + (b1.size + b2.size + b3.size) * 4              # f32 biases
        + padded_batch * act_pad * 4                     # f32 probs out
    )

    return pl.pallas_call(
        actor_kernel,
        out_shape=jax.ShapeDtypeStruct((padded_batch, act_pad), jnp.float32),
        grid=grid,
        in_specs=[
            pl.BlockSpec((TB, in_dims), lambda i: (i, 0)),   # batch-tiled state
            resident(w1.shape, lambda i: (0, 0)),            # VMEM-resident params
            resident(b1.shape, lambda i: (0, 0)),
            resident(w2.shape, lambda i: (0, 0)),
            resident(b2.shape, lambda i: (0, 0)),
            resident(w3.shape, lambda i: (0, 0)),
            resident(b3.shape, lambda i: (0, 0)),
        ],
        out_specs=pl.BlockSpec((TB, act_pad), lambda i: (i, 0)),
        compiler_params=pltpu.CompilerParams(
            dimension_semantics=("parallel",),   # batch tiles split across TCs (v7x)
        ),
        cost_estimate=pl.CostEstimate(
            flops=flops,
            transcendentals=transcendentals,
            bytes_accessed=bytes_accessed,
        ),
    )(x, w1, b1, w2, b2, w3, b3)


def actor_forward(state, prepped_params, n_actions):
    """Module-faithful wrapper: (batch, n_actions) Categorical probabilities.
    (Prefer actor_forward_padded + direct indexing in hot loops -- this slice is
    an extra HBM copy.)"""
    probs_pad = actor_forward_padded(state, prepped_params)
    return probs_pad[:state.shape[0], :n_actions]


def _reference(state, params):
    w1, b1, w2, b2, w3, b3 = params
    h1 = jnp.maximum(state @ w1 + b1, 0.0)
    h2 = jnp.maximum(h1 @ w2 + b2, 0.0)
    return jax.nn.softmax(h2 @ w3 + b3, axis=-1)


if __name__ == "__main__":
    # Small shapes consistent with the module: input_dims=(32,), n_actions=4
    batch, input_dims, fc1_dims, fc2_dims, n_actions = 8, 32, 256, 256, 4

    key = jax.random.PRNGKey(0)
    k_state, k_params = jax.random.split(key)

    params = init_params(k_params, input_dims, fc1_dims, fc2_dims, n_actions)
    prepped = prepare_params(params)

    # --- tiny-batch path (single tile) ---
    state = jax.random.normal(k_state, (batch, input_dims), jnp.float32)
    probs_pad = jax.block_until_ready(actor_forward_padded(state, prepped))
    probs = probs_pad[:batch, :n_actions]
    ref = _reference(state, params)

    assert probs.shape == (batch, n_actions)
    # Padded action columns must be exactly 0 (safe to index the padded buffer).
    assert bool(jnp.all(probs_pad[:batch, n_actions:] == 0.0))
    assert bool(jnp.all(probs >= 0.0))
    # bf16 matmul inputs + approx reciprocal -> loosened tolerances.
    assert jnp.allclose(jnp.sum(probs, axis=-1), 1.0, atol=1e-2)
    assert jnp.allclose(probs, ref, atol=3e-2)

    # --- multi-tile path (>=2 grid steps, padded batch rows) ---
    batch2 = 40
    state2 = jax.random.normal(jax.random.PRNGKey(1), (batch2, input_dims), jnp.float32)
    probs2 = jax.block_until_ready(actor_forward(state2, prepped, n_actions))
    ref2 = _reference(state2, params)
    assert probs2.shape == (batch2, n_actions)
    assert jnp.allclose(jnp.sum(probs2, axis=-1), 1.0, atol=1e-2)
    assert jnp.allclose(probs2, ref2, atol=3e-2)

    print("KERNEL_OK")
</pallas_src>

<mosaic_0001>
module attributes {stable_mosaic.version = 11 : i64} {
  func.func @actor_kernel(%arg0: i32, %arg1: memref<8x32xbf16, #tpu.memory_space<vmem>>, %arg2: memref<32x256xbf16, #tpu.memory_space<vmem>>, %arg3: memref<1x256xf32, #tpu.memory_space<vmem>>, %arg4: memref<256x256xbf16, #tpu.memory_space<vmem>>, %arg5: memref<1x256xf32, #tpu.memory_space<vmem>>, %arg6: memref<256x128xbf16, #tpu.memory_space<vmem>>, %arg7: memref<1x128xf32, #tpu.memory_space<vmem>>, %arg8: memref<8x128xf32, #tpu.memory_space<vmem>>) attributes {dimension_semantics = [#tpu.dimension_semantics<parallel>], iteration_bounds = array<i64: 1>, scalar_prefetch = 0 : i64, scratch_operands = 0 : i64, tpu.core_type = #tpu.core_type<tc>, window_params = [{transform_indices = @transform_0, window_bounds = array<i64: 8, 32>}, {pipeline_mode = #tpu.pipeline_mode<synchronous>, transform_indices = @transform_1, window_bounds = array<i64: 32, 256>}, {pipeline_mode = #tpu.pipeline_mode<synchronous>, transform_indices = @transform_2, window_bounds = array<i64: 1, 256>}, {pipeline_mode = #tpu.pipeline_mode<synchronous>, transform_indices = @transform_3, window_bounds = array<i64: 256, 256>}, {pipeline_mode = #tpu.pipeline_mode<synchronous>, transform_indices = @transform_4, window_bounds = array<i64: 1, 256>}, {pipeline_mode = #tpu.pipeline_mode<synchronous>, transform_indices = @transform_5, window_bounds = array<i64: 256, 128>}, {pipeline_mode = #tpu.pipeline_mode<synchronous>, transform_indices = @transform_6, window_bounds = array<i64: 1, 128>}, {transform_indices = @transform_7, window_bounds = array<i64: 8, 128>}]} {
    %c0 = arith.constant 0 : index
    %c0_0 = arith.constant 0 : index
    %0 = vector.load %arg1[%c0, %c0_0] : memref<8x32xbf16, #tpu.memory_space<vmem>>, vector<8x32xbf16>
    %c0_1 = arith.constant 0 : index
    %c0_2 = arith.constant 0 : index
    %1 = vector.load %arg2[%c0_1, %c0_2] : memref<32x256xbf16, #tpu.memory_space<vmem>>, vector<32x256xbf16>
    %cst = arith.constant dense<0.000000e+00> : vector<8x256xf32>
    %2 = tpu.matmul %0, %1, %cst {dimension_numbers = #tpu.dot_dimension_numbers<[1], [0], [0], [1], [0, 0, 1, 1], [], []>} : vector<8x32xbf16>, vector<32x256xbf16>, vector<8x256xf32> -> vector<8x256xf32>
    %c0_3 = arith.constant 0 : index
    %c0_4 = arith.constant 0 : index
    %3 = vector.load %arg3[%c0_3, %c0_4] : memref<1x256xf32, #tpu.memory_space<vmem>>, vector<1x256xf32>
    %4 = vector.broadcast %3 : vector<1x256xf32> to vector<8x256xf32>
    %5 = arith.addf %2, %4 : vector<8x256xf32>
    %cst_5 = arith.constant 0.000000e+00 : f32
    %6 = vector.broadcast %cst_5 : f32 to vector<8x256xf32>
    %7 = arith.maximumf %5, %6 : vector<8x256xf32>
    %8 = arith.truncf %7 : vector<8x256xf32> to vector<8x256xbf16>
    %c0_6 = arith.constant 0 : index
    %c0_7 = arith.constant 0 : index
    %9 = vector.load %arg4[%c0_6, %c0_7] : memref<256x256xbf16, #tpu.memory_space<vmem>>, vector<256x256xbf16>
    %cst_8 = arith.constant dense<0.000000e+00> : vector<8x256xf32>
    %10 = tpu.matmul %8, %9, %cst_8 {dimension_numbers = #tpu.dot_dimension_numbers<[1], [0], [0], [1], [0, 0, 1, 1], [], []>} : vector<8x256xbf16>, vector<256x256xbf16>, vector<8x256xf32> -> vector<8x256xf32>
    %c0_9 = arith.constant 0 : index
    %c0_10 = arith.constant 0 : index
    %11 = vector.load %arg5[%c0_9, %c0_10] : memref<1x256xf32, #tpu.memory_space<vmem>>, vector<1x256xf32>
    %12 = vector.broadcast %11 : vector<1x256xf32> to vector<8x256xf32>
    %13 = arith.addf %10, %12 : vector<8x256xf32>
    %cst_11 = arith.constant 0.000000e+00 : f32
    %14 = vector.broadcast %cst_11 : f32 to vector<8x256xf32>
    %15 = arith.maximumf %13, %14 : vector<8x256xf32>
    %16 = arith.truncf %15 : vector<8x256xf32> to vector<8x256xbf16>
    %c0_12 = arith.constant 0 : index
    %c0_13 = arith.constant 0 : index
    %17 = vector.load %arg6[%c0_12, %c0_13] : memref<256x128xbf16, #tpu.memory_space<vmem>>, vector<256x128xbf16>
    %cst_14 = arith.constant dense<0.000000e+00> : vector<8x128xf32>
    %18 = tpu.matmul %16, %17, %cst_14 {dimension_numbers = #tpu.dot_dimension_numbers<[1], [0], [0], [1], [0, 0, 1, 1], [], []>} : vector<8x256xbf16>, vector<256x128xbf16>, vector<8x128xf32> -> vector<8x128xf32>
    %c0_15 = arith.constant 0 : index
    %c0_16 = arith.constant 0 : index
    %19 = vector.load %arg7[%c0_15, %c0_16] : memref<1x128xf32, #tpu.memory_space<vmem>>, vector<1x128xf32>
    %20 = vector.broadcast %19 : vector<1x128xf32> to vector<8x128xf32>
    %21 = arith.addf %18, %20 : vector<8x128xf32>
    %cst_17 = arith.constant dense<0xFF800000> : vector<8xf32>
    %22 = vector.multi_reduction <maximumf>, %21, %cst_17 [1] : vector<8x128xf32> to vector<8xf32>
    %23 = vector.shape_cast %22 : vector<8xf32> to vector<8x1xf32>
    %24 = vector.broadcast %23 : vector<8x1xf32> to vector<8x128xf32>
    %25 = arith.subf %21, %24 : vector<8x128xf32>
    %26 = math.exp %25 : vector<8x128xf32>
    %cst_18 = arith.constant dense<0.000000e+00> : vector<8xf32>
    %27 = vector.multi_reduction <add>, %26, %cst_18 [1] : vector<8x128xf32> to vector<8xf32>
    %28 = vector.shape_cast %27 : vector<8xf32> to vector<8x1xf32>
    %29 = tpu.reciprocal %28 {approx = true} : vector<8x1xf32> -> vector<8x1xf32>
    %30 = vector.broadcast %29 : vector<8x1xf32> to vector<8x128xf32>
    %31 = arith.mulf %26, %30 : vector<8x128xf32>
    %c0_19 = arith.constant 0 : index
    %c0_20 = arith.constant 0 : index
    %32 = vector.load %arg8[%c0_19, %c0_20] : memref<8x128xf32, #tpu.memory_space<vmem>>, vector<8x128xf32>
    tpu.vector_store %arg8[%c0_19, %c0_20], %31 {strides = array<i32>} : memref<8x128xf32, #tpu.memory_space<vmem>>, vector<8x128xf32>,
    return
  }
  func.func @transform_0(%arg0: i32) -> (i32, i32) {
    %c0_i32 = arith.constant 0 : i32
    %c0_i32_0 = arith.constant 0 : i32
    return %arg0, %c0_i32 : i32, i32
  }
  func.func @transform_1(%arg0: i32) -> (i32, i32) {
    %c0_i32 = arith.constant 0 : i32
    %c0_i32_0 = arith.constant 0 : i32
    %c0_i32_1 = arith.constant 0 : i32
    return %c0_i32, %c0_i32_0 : i32, i32
  }
  func.func @transform_2(%arg0: i32) -> (i32, i32) {
    %c0_i32 = arith.constant 0 : i32
    %c0_i32_0 = arith.constant 0 : i32
    %c0_i32_1 = arith.constant 0 : i32
    return %c0_i32, %c0_i32_0 : i32, i32
  }
  func.func @transform_3(%arg0: i32) -> (i32, i32) {
    %c0_i32 = arith.constant 0 : i32
    %c0_i32_0 = arith.constant 0 : i32
    %c0_i32_1 = arith.constant 0 : i32
    return %c0_i32, %c0_i32_0 : i32, i32
  }
  func.func @transform_4(%arg0: i32) -> (i32, i32) {
    %c0_i32 = arith.constant 0 : i32
    %c0_i32_0 = arith.constant 0 : i32
    %c0_i32_1 = arith.constant 0 : i32
    return %c0_i32, %c0_i32_0 : i32, i32
  }
  func.func @transform_5(%arg0: i32) -> (i32, i32) {
    %c0_i32 = arith.constant 0 : i32
    %c0_i32_0 = arith.constant 0 : i32
    %c0_i32_1 = arith.constant 0 : i32
    return %c0_i32, %c0_i32_0 : i32, i32
  }
  func.func @transform_6(%arg0: i32) -> (i32, i32) {
    %c0_i32 = arith.constant 0 : i32
    %c0_i32_0 = arith.constant 0 : i32
    %c0_i32_1 = arith.constant 0 : i32
    return %c0_i32, %c0_i32_0 : i32, i32
  }
  func.func @transform_7(%arg0: i32) -> (i32, i32) {
    %c0_i32 = arith.constant 0 : i32
    %c0_i32_0 = arith.constant 0 : i32
    return %arg0, %c0_i32 : i32, i32
  }
}

</mosaic_0001>

<bundles_post_ra>
// kernel: tpu_custom_call.1
= control target key start
LH: loop header
LB: loop body
LE: loop exit
PB: predicated region body
PF: predicated region fallthrough
CT: control target
= control target key end

     0   :  { %12 = vsyncpa [#allocation3], 0  ;;  %s1113_s0 = inlined_call_operand.hbm [shape: bf16[8,32], index: 0, kind: input, shape index: {}]   ;;  %s1114_s1 = inlined_call_operand.hbm [shape: bf16[32,256], index: 1, kind: input, shape index: {}]   ;;  %s1115_s2 = inlined_call_operand.hbm [shape: f32[1,256], index: 2, kind: input, shape index: {}]   ;;  %s1116_s3 = inlined_call_operand.hbm [shape: bf16[256,256], index: 3, kind: input, shape index: {}]   ;;  %s1117_s4 = inlined_call_operand.vmem [shape: f32[1,256], index: 4, kind: input, shape index: {}]   ;;  %s1118_s5 = inlined_call_operand.hbm [shape: bf16[256,128], index: 5, kind: input, shape index: {}]   ;;  %s1119_s6 = inlined_call_operand.vmem [shape: f32[1,128], index: 6, kind: input, shape index: {}]   ;;  %s1120_s7 = inlined_call_operand.hbm [shape: f32[8,128], index: 7, kind: output, shape index: {}]  }
   0x1   :  { %13 = vsyncpa [#allocation6], 0 }
   0x2   :  { %14 = vsyncpa [#allocation9], 0  ;;  %s31_s26 = sshll.u32 %s1114_s1, 4  ;;  %s32_s26 = int_to_ptr.hbm [resolvable:$true] %s31_s26 }
   0x3   :  { %15 = vsyncpa [#allocation4], 0  ;;  %s1037_s27 = smov [#allocation5]   ;;  %s55_s8 = sshll.u32 %s1116_s3, 4  ;;  %s56_s8 = int_to_ptr.hbm [resolvable:$true] %s55_s8 }
   0x4   :  { %s33_s28 = sshll.u32 %s1037_s27, 4  ;;  %s1038_s9 = smov 128   ;;  %s34_s28 = int_to_ptr.vmem [resolvable:$true] %s33_s28 }
   0x5   :  { %s1039_s10 = smov 8   ;;  %s1040_s11 = smov [#allocation8]  }
   0x6   :  { %39 = dma.hbm_to_vmem [thread:$0]  %s32_s26, 512, %s34_s28, [#allocation6], %s1038_s9, %s1038_s9, %s1039_s10  }
   0x7   :  { %s57_s12 = sshll.u32 %s1040_s11, 4  ;;  %s21_s15 = sshll.u32 %s1113_s0, 4  ;;  %s58_s12 = int_to_ptr.vmem [resolvable:$true] %s57_s12  ;;  %s22_s15 = int_to_ptr.hbm [resolvable:$true] %s21_s15 }
   0x8   :  { %63 = dma.hbm_to_vmem [thread:$0]  %s56_s8, 4096, %s58_s12, [#allocation9], %s1038_s9, %s1038_s9, %s1039_s10  }
   0x9   :  { %s45_s17 = sshll.u32 %s1115_s2, 4  ;;  %s1041_s18 = smov [#allocation2]   ;;  %s46_s17 = int_to_ptr.hbm [resolvable:$true] %s45_s17 }
   0xa   :  { %s23_s19 = sshll.u32 %s1041_s18, 4  ;;  %s1042_s3 = smov [#allocation7]   ;;  %s24_s19 = int_to_ptr.vmem [resolvable:$true] %s23_s19 }
   0xb   :  { %26 = dma.hbm_to_vmem [thread:$0]  %s22_s15, 64, %s24_s19, [#allocation3]  }
   0xc   :  { %s47_s20 = sshll.u32 %s1042_s3, 4  ;;  %s70_s23 = sshll.u32 %s1118_s5, 4  ;;  %s48_s20 = int_to_ptr.vmem [resolvable:$true] %s47_s20  ;;  %s71_s23 = int_to_ptr.hbm [resolvable:$true] %s70_s23 }
   0xd   :  { %50 = dma.hbm_to_vmem [thread:$0]  %s46_s17, 32, %s48_s20, [#allocation6]  }
   0xe   :  { %s1043_s0 = smov [#allocation10]   ;;  %s1044_s25 = smov 64  }
   0xf   :  { %s72_s24 = sshll.u32 %s1043_s0, 4  ;;  %s1045_s26 = smov 4   ;;  %s73_s24 = int_to_ptr.vmem [resolvable:$true] %s72_s24 }
  0x10   :  { %78 = dma.hbm_to_vmem [thread:$0]  %s71_s23, 2048, %s73_s24, [#allocation9], %s1044_s25, %s1044_s25, %s1045_s26  }
  0x11   :  { %1029 = dma.done.wait [#allocation3], 64  }
  0x12   :  { %1030 = vsyncadd [#allocation3], 4294967232 }
  0x13   :  { %1031 = dma.done.wait [#allocation6], 544  }
  0x14   :  { %1032 = vsyncadd [#allocation6], 4294966752 }
  0x15   :  { %1033 = dma.done.wait [#allocation9], 6144  }
  0x16   :  { %1034 = vsyncadd [#allocation9], 4294961152  ;;  %v618_v0 = vld [vmem:[#allocation5 + $0x10] sm:$0xf]  ;;  %v821_v1 = vld [vmem:[#allocation5 + $0x14] sm:$0xf0] }
  0x17   :  { %v820_v2 = vld [vmem:[#allocation5 + $0x14] sm:$0xf]  ;;  %v619_v3 = vor.u32 %v821_v1, %v618_v0  ;;  %v620_v4 = vld [vmem:[#allocation5 + $0x18] sm:$0xf0]  ;;  %v610_v5 = vld [vmem:[#allocation5] sm:$0xf] }
  0x18   :  { %v819_v6 = vld [vmem:[#allocation5 + $0x4] sm:$0xf0]  ;;  %v623_v7 = vor.u32 %v820_v2, %v620_v4  ;;  %v818_v8 = vld [vmem:[#allocation5 + $0x4] sm:$0xf]  ;;  %v612_v9 = vld [vmem:[#allocation5 + $0x8] sm:$0xf0] }
  0x19   :  { %vm133_vm0 = vcmask 261120   ;;  %143 = vmatpush.bf16.msra.mxu0 %v619_v3  ;;  %v611_v10 = vor.u32 %v819_v6, %v610_v5  ;;  %v684_v11 = vld [vmem:[#allocation8 + $0x70] sm:$0xf]  ;;  %v837_v12 = vld [vmem:[#allocation8 + $0x74] sm:$0xf0]  ;;  %v615_v14 = vor.u32 %v818_v8, %v612_v9  ;;  %s1046_s28 = smov [#allocation11]  }
  0x1a   :  { %v748_v13 = vld [vmem:[#allocation8 + $0xf0] sm:$0xf]  ;;  %156 = vmatpush.bf16.msra.mxu1 %v623_v7  ;;  %v685_v15 = vor.u32 %v837_v12, %v684_v11  ;;  %v853_v16 = vld [vmem:[#allocation8 + $0xf4] sm:$0xf0]  ;;  %v836_v17 = vld [vmem:[#allocation8 + $0x74] sm:$0xf] }
  0x1b   :  { %v686_v18 = vld [vmem:[#allocation8 + $0x78] sm:$0xf0]  ;;  %v749_v20 = vor.u32 %v853_v16, %v748_v13  ;;  %v852_v22 = vld [vmem:[#allocation8 + $0xf4] sm:$0xf]  ;;  %v676_v24 = vld [vmem:[#allocation8 + $0x60] sm:$0xf] }
  0x1c   :  { %v102_v19 = vld [vmem:[#allocation2] sm:$0xf]  ;;  %v689_v21 = vor.u32 %v836_v17, %v686_v18  ;;  %365 = vmatpush.bf16.msra.mxu2 %v685_v15  ;;  %v835_v26 = vld [vmem:[#allocation8 + $0x64] sm:$0xf0]  ;;  %v740_v27 = vld [vmem:[#allocation8 + $0xe0] sm:$0xf] }
  0x1d   :  { %v750_v23 = vld [vmem:[#allocation8 + $0xf8] sm:$0xf0]  ;;  %v851_v28 = vld [vmem:[#allocation8 + $0xe4] sm:$0xf0]  ;;  %144 = vmatpush.bf16.msra.mxu0 %v611_v10  ;;  %378 = vmatpush.bf16.msra.mxu3 %v749_v20  ;;  %v677_v29 = vor.u32 %v835_v26, %v676_v24  ;;  %v834_v31 = vld [vmem:[#allocation8 + $0x64] sm:$0xf] }
  0x1e   :  { %v753_v25 = vor.u32 %v852_v22, %v750_v23  ;;  %v741_v30 = vor.u32 %v851_v28, %v740_v27  ;;  %v678_v32 = vld [vmem:[#allocation8 + $0x68] sm:$0xf0]  ;;  %v850_v33 = vld [vmem:[#allocation8 + $0xe4] sm:$0xf]  ;;  %157 = vmatpush.bf16.msra.mxu1 %v615_v14  ;;  %v668_v36 = vld [vmem:[#allocation8 + $0x50] sm:$0xf] }
  0x1f   :  { %v681_v34 = vor.u32 %v834_v31, %v678_v32  ;;  %v742_v35 = vld [vmem:[#allocation8 + $0xe8] sm:$0xf0]  ;;  %v833_v37 = vld [vmem:[#allocation8 + $0x54] sm:$0xf0]  ;;  %v732_v39 = vld [vmem:[#allocation8 + $0xd0] sm:$0xf] }
  0x20   :  { %v745_v38 = vor.u32 %v850_v33, %v742_v35  ;;  %v849_v40 = vld [vmem:[#allocation8 + $0xd4] sm:$0xf0]  ;;  %v832_v41 = vld [vmem:[#allocation8 + $0x54] sm:$0xf]  ;;  %624 = vmatmul.msk.bf16.vlgmr.msra.gmra.mxu0 %vm133_vm0, %v102_v19  ;;  %366 = vmatpush.bf16.msra.mxu2 %v677_v29  ;;  %v669_v42 = vor.u32 %v833_v37, %v668_v36  ;;  %v670_v43 = vld [vmem:[#allocation8 + $0x58] sm:$0xf0] }
  0x21   :  { %391 = vmatpush.bf16.msrb.mxu0 %v689_v21  ;;  %v848_v44 = vld [vmem:[#allocation8 + $0xd4] sm:$0xf]  ;;  %v734_v45 = vld [vmem:[#allocation8 + $0xd8] sm:$0xf0]  ;;  %625 = vmatmul.msk.bf16.vlgmr.msra.gmra.mxu1 %vm133_vm0, %v102_v19  ;;  %v733_v46 = vor.u32 %v849_v40, %v732_v39  ;;  %v660_v47 = vld [vmem:[#allocation8 + $0x40] sm:$0xf]  ;;  %v673_v49 = vor.u32 %v832_v41, %v670_v43 }
  0x22   :  { %404 = vmatpush.bf16.msrb.mxu1 %v753_v25  ;;  %379 = vmatpush.bf16.msra.mxu3 %v741_v30  ;;  %v831_v48 = vld [vmem:[#allocation8 + $0x44] sm:$0xf0]  ;;  %v724_v50 = vld [vmem:[#allocation8 + $0xc0] sm:$0xf]  ;;  %v737_v52 = vor.u32 %v848_v44, %v734_v45  ;;  %v830_v53 = vld [vmem:[#allocation8 + $0x44] sm:$0xf] }
  0x23   :  { %v847_v51 = vld [vmem:[#allocation8 + $0xc4] sm:$0xf0]  ;;  %v662_v54 = vld [vmem:[#allocation8 + $0x48] sm:$0xf0]  ;;  %v661_v55 = vor.u32 %v831_v48, %v660_v47  ;;  %v846_v56 = vld [vmem:[#allocation8 + $0xc4] sm:$0xf] }
  0x24   :  { %367 = vmatpush.bf16.msra.mxu2 %v669_v42  ;;  %v726_v57 = vld [vmem:[#allocation8 + $0xc8] sm:$0xf0]  ;;  %v725_v58 = vor.u32 %v847_v51, %v724_v50  ;;  %v652_v59 = vld [vmem:[#allocation8 + $0x30] sm:$0xf]  ;;  %v829_v60 = vld [vmem:[#allocation8 + $0x34] sm:$0xf0]  ;;  %v665_v61 = vor.u32 %v830_v53, %v662_v54 }
  0x25   :  { %392 = vmatpush.bf16.msrb.mxu0 %v681_v34  ;;  %v716_v62 = vld [vmem:[#allocation8 + $0xb0] sm:$0xf]  ;;  %v845_v63 = vld [vmem:[#allocation8 + $0xb4] sm:$0xf0]  ;;  %v729_v0 = vor.u32 %v846_v56, %v726_v57  ;;  %v828_v1 = vld [vmem:[#allocation8 + $0x34] sm:$0xf]  ;;  %v653_v3 = vor.u32 %v829_v60, %v652_v59 }
  0x26   :  { %405 = vmatpush.bf16.msrb.mxu1 %v745_v38  ;;  %380 = vmatpush.bf16.msra.mxu3 %v733_v46  ;;  %v654_v2 = vld [vmem:[#allocation8 + $0x38] sm:$0xf0]  ;;  %v844_v4 = vld [vmem:[#allocation8 + $0xb4] sm:$0xf]  ;;  %v717_v6 = vor.u32 %v845_v63, %v716_v62  ;;  %v644_v7 = vld [vmem:[#allocation8 + $0x20] sm:$0xf] }
  0x27   :  { %v718_v5 = vld [vmem:[#allocation8 + $0xb8] sm:$0xf0]  ;;  %v827_v8 = vld [vmem:[#allocation8 + $0x24] sm:$0xf0]  ;;  %v657_v9 = vor.u32 %v828_v1, %v654_v2  ;;  %v708_v10 = vld [vmem:[#allocation8 + $0xa0] sm:$0xf] }
  0x28   :  { %368 = vmatpush.bf16.msra.mxu2 %v661_v55  ;;  %v843_v11 = vld [vmem:[#allocation8 + $0xa4] sm:$0xf0]  ;;  %v721_v12 = vor.u32 %v844_v4, %v718_v5  ;;  %v826_v13 = vld [vmem:[#allocation8 + $0x24] sm:$0xf]  ;;  %v646_v14 = vld [vmem:[#allocation8 + $0x28] sm:$0xf0]  ;;  %v645_v15 = vor.u32 %v827_v8, %v644_v7 }
  0x29   :  { %393 = vmatpush.bf16.msrb.mxu0 %v673_v49  ;;  %v842_v16 = vld [vmem:[#allocation8 + $0xa4] sm:$0xf]  ;;  %v710_v17 = vld [vmem:[#allocation8 + $0xa8] sm:$0xf0]  ;;  %v709_v18 = vor.u32 %v843_v11, %v708_v10  ;;  %v649_v19 = vor.u32 %v826_v13, %v646_v14  ;;  %v636_v21 = vld [vmem:[#allocation8 + $0x10] sm:$0xf] }
  0x2a   :  { %406 = vmatpush.bf16.msrb.mxu1 %v737_v52  ;;  %381 = vmatpush.bf16.msra.mxu3 %v725_v58  ;;  %v713_v20 = vor.u32 %v842_v16, %v710_v17  ;;  %v825_v22 = vld [vmem:[#allocation8 + $0x14] sm:$0xf0]  ;;  %v700_v23 = vld [vmem:[#allocation8 + $0x90] sm:$0xf]  ;;  %v824_v26 = vld [vmem:[#allocation8 + $0x14] sm:$0xf] }
  0x2b   :  { %v637_v24 = vor.u32 %v825_v22, %v636_v21  ;;  %v841_v25 = vld [vmem:[#allocation8 + $0x94] sm:$0xf0]  ;;  %v638_v27 = vld [vmem:[#allocation8 + $0x18] sm:$0xf0]  ;;  %v840_v30 = vld [vmem:[#allocation8 + $0x94] sm:$0xf] }
  0x2c   :  { %369 = vmatpush.bf16.msra.mxu2 %v653_v3  ;;  %v701_v28 = vor.u32 %v841_v25, %v700_v23  ;;  %v641_v29 = vor.u32 %v824_v26, %v638_v27  ;;  %v702_v31 = vld [vmem:[#allocation8 + $0x98] sm:$0xf0]  ;;  %v628_v33 = vld [vmem:[#allocation8] sm:$0xf]  ;;  %v823_v34 = vld [vmem:[#allocation8 + $0x4] sm:$0xf0] }
  0x2d   :  { %394 = vmatpush.bf16.msrb.mxu0 %v665_v61  ;;  %v705_v32 = vor.u32 %v840_v30, %v702_v31  ;;  %v692_v35 = vld [vmem:[#allocation8 + $0x80] sm:$0xf]  ;;  %v629_v36 = vor.u32 %v823_v34, %v628_v33  ;;  %v839_v37 = vld [vmem:[#allocation8 + $0x84] sm:$0xf0]  ;;  %v822_v38 = vld [vmem:[#allocation8 + $0x4] sm:$0xf] }
  0x2e   :  { %407 = vmatpush.bf16.msrb.mxu1 %v729_v0  ;;  %382 = vmatpush.bf16.msra.mxu3 %v717_v6  ;;  %v630_v39 = vld [vmem:[#allocation8 + $0x8] sm:$0xf0]  ;;  %v693_v40 = vor.u32 %v839_v37, %v692_v35  ;;  %v838_v42 = vld [vmem:[#allocation8 + $0x84] sm:$0xf]  ;;  %v869_v45 = vld [vmem:[#allocation10 + $0x78] sm:$0xff]  ;;  %s594_s29 = sshll.u32 %s1046_s28, 4  ;;  %s595_s29 = int_to_ptr.vmem [resolvable:$true] %s594_s29 }
  0x2f   :  { %v633_v41 = vor.u32 %v822_v38, %v630_v39  ;;  %v694_v43 = vld [vmem:[#allocation8 + $0x88] sm:$0xf0]  ;;  %v861_v46 = vld [vmem:[#allocation10 + $0x38] sm:$0xff]  ;;  %v868_v47 = vld [vmem:[#allocation10 + $0x70] sm:$0xff] }
  0x30   :  { %370 = vmatpush.bf16.msra.mxu2 %v645_v15  ;;  %v697_v44 = vor.u32 %v838_v42, %v694_v43  ;;  %v860_v48 = vld [vmem:[#allocation10 + $0x30] sm:$0xff]  ;;  %v867_v49 = vld [vmem:[#allocation10 + $0x68] sm:$0xff]  ;;  %v866_v51 = vld [vmem:[#allocation10 + $0x60] sm:$0xff] }
  0x31   :  { %395 = vmatpush.bf16.msrb.mxu0 %v657_v9  ;;  %v859_v50 = vld [vmem:[#allocation10 + $0x28] sm:$0xff]  ;;  %v858_v52 = vld [vmem:[#allocation10 + $0x20] sm:$0xff]  ;;  %v865_v53 = vld [vmem:[#allocation10 + $0x58] sm:$0xff] }
  0x32   :  { %408 = vmatpush.bf16.msrb.mxu1 %v721_v12  ;;  %383 = vmatpush.bf16.msra.mxu3 %v709_v18  ;;  %v107_v54 = vld [vmem:[#allocation7] sm:$0x3]  ;;  %v864_v55 = vld [vmem:[#allocation10 + $0x50] sm:$0xff]  ;;  %v863_v5 = vld [vmem:[#allocation10 + $0x48] sm:$0xff] }
  0x33   :  { %v109_v56 = vperm.slane %v107_v54, 0  ;;  %v110_v57 = vperm.slane %v107_v54, 1  ;;  %v857_v4 = vld [vmem:[#allocation10 + $0x18] sm:$0xff]  ;;  %v856_v6 = vld [vmem:[#allocation10 + $0x10] sm:$0xff]  ;;  %v862_v7 = vld [vmem:[#allocation10 + $0x40] sm:$0xff] }
  0x34   :  { %371 = vmatpush.bf16.msra.mxu2 %v637_v24  ;;  %v855_v8 = vld [vmem:[#allocation10 + $0x8] sm:$0xff]  ;;  %v854_v9 = vld [vmem:[#allocation10] sm:$0xff]  ;;  %v199_v10 = vld [vmem:[%s1117_s4] sm:$0x3] }
  0x35   :  { %396 = vmatpush.bf16.msrb.mxu0 %v649_v19  ;;  %v202_v11 = vperm.slane %v199_v10, 1  ;;  %v201_v16 = vperm.slane %v199_v10, 0  ;;  %v880_v30 = vld [vmem:[%s1119_s6] ss:$0 sm:$0xff]  ;;  %s596_s6 = sshll.u32 %s1120_s7, 4  ;;  %s597_s6 = int_to_ptr.hbm [resolvable:$true] %s596_s6 }
  0x36   :  { %409 = vmatpush.bf16.msrb.mxu1 %v713_v20  ;;  %384 = vmatpush.bf16.msra.mxu3 %v701_v28 }
  0x38   :  { %372 = vmatpush.bf16.msra.mxu2 %v629_v36 }
  0x39   :  { %397 = vmatpush.bf16.msrb.mxu0 %v641_v29 }
  0x3a   :  { %410 = vmatpush.bf16.msrb.mxu1 %v705_v32  ;;  %385 = vmatpush.bf16.msra.mxu3 %v693_v40 }
  0x3c   :  { %553 = vmatpush.bf16.msrb.mxu2 %v861_v46 }
  0x3d   :  { %398 = vmatpush.bf16.msrb.mxu0 %v633_v41 }
  0x3e   :  { %411 = vmatpush.bf16.msrb.mxu1 %v697_v44  ;;  %566 = vmatpush.bf16.msrb.mxu3 %v869_v45 }
  0x40   :  { %554 = vmatpush.bf16.msrb.mxu2 %v860_v48 }
  0x42   :  { %567 = vmatpush.bf16.msrb.mxu3 %v868_v47 }
  0x44   :  { %555 = vmatpush.bf16.msrb.mxu2 %v859_v50 }
  0x46   :  { %568 = vmatpush.bf16.msrb.mxu3 %v867_v49 }
  0x48   :  { %556 = vmatpush.bf16.msrb.mxu2 %v858_v52 }
  0x4a   :  { %569 = vmatpush.bf16.msrb.mxu3 %v866_v51 }
  0x4c   :  { %557 = vmatpush.bf16.msrb.mxu2 %v857_v4 }
  0x4e   :  { %570 = vmatpush.bf16.msrb.mxu3 %v865_v53 }
  0x50   :  { %558 = vmatpush.bf16.msrb.mxu2 %v856_v6 }
  0x52   :  { %571 = vmatpush.bf16.msrb.mxu3 %v864_v55 }
  0x54   :  { %559 = vmatpush.bf16.msrb.mxu2 %v855_v8 }
  0x56   :  { %572 = vmatpush.bf16.msrb.mxu3 %v863_v5 }
  0x58   :  { %560 = vmatpush.bf16.msrb.mxu2 %v854_v9 }
  0x5a   :  { %573 = vmatpush.bf16.msrb.mxu3 %v862_v7 }
  0x9d   :  { %v146_v58 = vpop.f32.mrf.mxu0 }
  0x9e   :  { %v147_v59 = vadd.f32 %v146_v58, %v109_v56  ;;  %v159_v60 = vpop.f32.mrf.mxu1 }
  0x9f   :  { %v160_v61 = vadd.f32 %v159_v60, %v110_v57 }
  0xa0   :  { %v163_v62 = vmax.f32 %v147_v59, 0.0 }
  0xa1   :  { %v164_v63 = vmax.f32 %v160_v61, 0.0 }
  0xa2   :  { %v165_v0 = vpack.c.bf16 %v163_v62, %v163_v62 }
  0xa3   :  { %v166_v1 = vpack.c.bf16 %v164_v63, %v164_v63 }
  0xa4   :  { %373 = vmatmul.bf16.vlgmr.msra.gmra.mxu2 %v165_v0  ;;  %399 = vmatmul.bf16.vlgmr.msrb.gmra.mxu0 %v165_v0 }
  0xa5   :  { %386 = vmatmul.bf16.vlgmr.msra.gmra.mxu3 %v166_v1  ;;  %412 = vmatmul.bf16.vlgmr.msrb.gmra.mxu1 %v166_v1  ;;  %v148_v2 = vpop.f32.mrf.mxu0 }
  0xa6   :  { %v161_v3 = vpop.f32.mrf.mxu1 }
 0x121   :  { %v400_v12 = vpop.f32.mrf.mxu0 }
 0x122   :  { %v401_v13 = vadd.f32 %v400_v12, %v202_v11  ;;  %v413_v14 = vpop.f32.mrf.mxu1 }
 0x124   :  { %v414_v15 = vadd.f32 %v413_v14, %v401_v13 }
 0x126   :  { %v418_v17 = vmax.f32 %v414_v15, 0.0 }
 0x127   :  { %v374_v18 = vpop.f32.mrf.mxu2 }
 0x128   :  { %v420_v19 = vpack.c.bf16 %v418_v17, %v418_v17  ;;  %v375_v20 = vadd.f32 %v374_v18, %v201_v16  ;;  %v387_v21 = vpop.f32.mrf.mxu3 }
 0x129   :  { %v402_v22 = vpop.f32.mrf.mxu0 }
 0x12a   :  { %v388_v23 = vadd.f32 %v387_v21, %v375_v20  ;;  %v415_v24 = vpop.f32.mrf.mxu1  ;;  %574 = vmatmul.bf16.vlgmr.msrb.gmra.mxu3 %v420_v19 }
 0x12c   :  { %v417_v25 = vmax.f32 %v388_v23, 0.0 }
 0x12e   :  { %v419_v26 = vpack.c.bf16 %v417_v25, %v417_v25 }
 0x12f   :  { %v376_v27 = vpop.f32.mrf.mxu2 }
 0x130   :  { %v389_v28 = vpop.f32.mrf.mxu3  ;;  %561 = vmatmul.bf16.vlgmr.msrb.gmra.mxu2 %v419_v26 }
 0x1ad   :  { %v575_v29 = vpop.f32.mrf.mxu3 }
 0x1b3   :  { %v562_v31 = vpop.f32.mrf.mxu2 }
 0x1b4   :  { %v563_v32 = vadd.f32 %v880_v30, %v562_v31 }
 0x1b5   :  { %v577_v33 = vpop.f32.mrf.mxu3 }
 0x1b6   :  { %v576_v34 = vadd.f32 %v575_v29, %v563_v32 }
 0x1b8   :  { %579 = vmax.xlane.f32.xlu0 %v576_v34 }
 0x1bb   :  { %v564_v35 = vpop.f32.mrf.mxu2 }
 0x22b   :  { %v580_v36 = vpop.xlane.xlu0 %579 }
 0x22c   :  { %v581_v37 = vsub.f32 %v576_v34, %v580_v36 }
 0x22e   :  { %v582_v38 = vmul.f32 1.442695, %v581_v37 }
 0x230   :  { %881 = vpow2.f32 %v582_v38 }
 0x236   :  { %v882_v39 = vpop.eup %881 }
 0x237   :  { %584 = vadd.xlane.f32.xlu0 %v882_v39 }
 0x2aa   :  { %v585_v40 = vpop.xlane.xlu0 %584 }
 0x2ab   :  { %883 = vrcp.f32 %v585_v40 }
 0x2b1   :  { %v884_v41 = vpop.eup %883 }
 0x2b2   :  { %v587_v42 = vmul.f32 %v884_v41, %v882_v39 }
 0x2b4   :  { %588 = vst [vmem:[#allocation11] sm:$0xff] %v587_v42 }
 0x2b5   :  { %599 = dma.vmem_to_hbm [thread:$0]  %s595_s29, 128, %s597_s6, [#allocation4]  }
 0x2b6   :  { %1035 = dma.done.wait [#allocation4], 128  }
 0x2b7   :  { %1036 = vsyncadd [#allocation4], 4294967168 }
 0x2b8   :  { %604 = vsyncpa [#allocation3], 1 }
 0x2b9   :  { %605 = vsyncpa [#allocation6], 1 }
 0x2ba   :  { %606 = vsyncpa [#allocation9], 1 }
 0x2bb   :  { %607 = vsyncpa [#allocation4], 1 }

</bundles_post_ra>
